<compile_context>
chip_gen: v7x
topology: tpu7x:2x2x1
jax: 0.10.0
libtpu: 0.0.40
codegen_flags: <defaults>
</compile_context>

<pallas_src>
import functools

import jax
import jax.numpy as jnp
from jax.experimental import pallas as pl
from jax.experimental.pallas import tpu as pltpu


# ----------------------------- helpers -----------------------------

def _round_up(x, m):
    return ((x + m - 1) // m) * m


def _pad2(x, rows, cols):
    return jnp.pad(x, ((0, rows - x.shape[0]), (0, cols - x.shape[1])))


@functools.lru_cache(maxsize=None)
def _vmem_limit_bytes():
    # ~85% of physical VMEM, capped at 100 MiB (v5e/v6e: 128 MiB, v7x: 64 MiB per TC).
    try:
        cap = int(pltpu.get_tpu_info().vmem_capacity_bytes)
    except Exception:
        cap = 64 << 20
    return min(int(cap * 0.85), 100 << 20)


@functools.lru_cache(maxsize=None)
def _is_multi_tensorcore():
    # Chips with >1 TensorCore per device (row-axis "parallel" split pays off).
    try:
        kind = jax.devices()[0].device_kind.lower()
    except Exception:
        return False
    return any(t in kind for t in ("v4", "v5p", "v7", "7x"))


def _pick_tile_m(n_pad, prefer_split):
    cands = (512, 256, 128)
    if prefer_split:
        for tm in cands:
            if n_pad % tm == 0 and n_pad // tm >= 2:
                return tm
    for tm in cands:
        if n_pad % tm == 0:
            return tm
    return n_pad  # n_pad is always a multiple of 128, so not reached


def _pick_tile_k(n_pad, tile_m, feat_pad, vmem_limit):
    # Per-K-step, double-buffered bytes: int8 A tile + bf16 neighbor-feature block.
    def step_bytes(tk):
        return 2 * (tile_m * tk + tk * feat_pad * 2)

    budget = vmem_limit // 2
    if step_bytes(n_pad) <= budget:
        return n_pad            # fully resident: single K step, no re-streaming
    for tk in (4096, 2048, 1024, 512, 256, 128):
        if n_pad % tk == 0 and step_bytes(tk) <= budget:
            return tk
    return 128


def _pick_proj_tile(n_pad):
    for tm in (1024, 512, 256, 128):
        if n_pad % tm == 0:
            return tm
    return n_pad


# ----------------------------- kernels -----------------------------

def _proj_kernel(h_ref, w_ref, o_ref):
    # P = H @ W_neigh (plain matmul, large row tile).
    o_ref[...] = jnp.dot(h_ref[...], w_ref[...],
                         preferred_element_type=jnp.float32).astype(o_ref.dtype)


def _sage_kernel(inv_ref, a_ref, hk_ref, hs_ref, ws_ref, wn_ref, b_ref, o_ref,
                 acc_ref, *, apply_relu):
    # Standard association: diag(1/deg) (A @ H) @ W_neigh + H_self @ W_self + b,
    # with a K-reduction over N accumulated in f32 VMEM scratch.
    k = pl.program_id(1)

    @pl.when(k == 0)
    def _():
        acc_ref[...] = jnp.zeros_like(acc_ref)

    acc_ref[...] += jnp.dot(a_ref[...].astype(jnp.bfloat16), hk_ref[...],
                            preferred_element_type=jnp.float32)

    @pl.when(k == pl.num_programs(1) - 1)
    def _():
        agg = (acc_ref[...] * inv_ref[...]).astype(jnp.bfloat16)
        out = (jnp.dot(hs_ref[...], ws_ref[...], preferred_element_type=jnp.float32)
               + jnp.dot(agg, wn_ref[...], preferred_element_type=jnp.float32)
               + b_ref[...])
        if apply_relu:
            out = jnp.maximum(out, 0.0)
        o_ref[...] = out.astype(o_ref.dtype)


def _sage_kernel_folded(inv_ref, a_ref, p_ref, hs_ref, ws_ref, b_ref, o_ref,
                        acc_ref, *, apply_relu):
    # Reassociated: diag(1/deg) (A @ P) + H_self @ W_self + b, P = H @ W_neigh.
    k = pl.program_id(1)

    @pl.when(k == 0)
    def _():
        acc_ref[...] = jnp.zeros_like(acc_ref)

    acc_ref[...] += jnp.dot(a_ref[...].astype(jnp.bfloat16), p_ref[...],
                            preferred_element_type=jnp.float32)

    @pl.when(k == pl.num_programs(1) - 1)
    def _():
        out = (acc_ref[...] * inv_ref[...]
               + jnp.dot(hs_ref[...], ws_ref[...], preferred_element_type=jnp.float32)
               + b_ref[...])
        if apply_relu:
            out = jnp.maximum(out, 0.0)
        o_ref[...] = out.astype(o_ref.dtype)


# --------------------------- pallas wrappers ---------------------------

def _project(h, w_p, vmem_limit):
    n_pad, fi_pad = h.shape
    fo_pad = w_p.shape[1]
    tile_rows = _pick_proj_tile(n_pad)
    cost = pl.CostEstimate(
        flops=2 * n_pad * fi_pad * fo_pad,
        transcendentals=0,
        bytes_accessed=2 * (n_pad * fi_pad + fi_pad * fo_pad + n_pad * fo_pad))
    return pl.pallas_call(
        _proj_kernel,
        out_shape=jax.ShapeDtypeStruct((n_pad, fo_pad), jnp.bfloat16),
        grid=(n_pad // tile_rows,),
        in_specs=[
            pl.BlockSpec((tile_rows, fi_pad), lambda i: (i, 0)),
            pl.BlockSpec((fi_pad, fo_pad), lambda i: (0, 0)),
        ],
        out_specs=pl.BlockSpec((tile_rows, fo_pad), lambda i: (i, 0)),
        compiler_params=pltpu.CompilerParams(
            dimension_semantics=("parallel",),
            vmem_limit_bytes=vmem_limit),
        cost_estimate=cost,
    )(h, w_p)


def _sage_layer(a_mask, inv_deg, h, ws_p, wn_p, b_p, *, tile_m, tile_k,
                apply_relu, out_dtype, vmem_limit):
    n_pad = a_mask.shape[0]
    fi_pad = h.shape[1]
    fo_pad = ws_p.shape[1]
    revisits = 1 if tile_k == n_pad else n_pad // tile_m
    cost = pl.CostEstimate(
        flops=2 * n_pad * n_pad * fi_pad + 4 * n_pad * fi_pad * fo_pad,
        transcendentals=0,
        bytes_accessed=(n_pad * n_pad                       # int8 adjacency mask
                        + 2 * revisits * n_pad * fi_pad     # streamed neighbor H
                        + 2 * n_pad * fi_pad                # self rows
                        + 4 * fi_pad * fo_pad               # weights
                        + n_pad * fo_pad * jnp.dtype(out_dtype).itemsize))
    kernel = functools.partial(_sage_kernel, apply_relu=apply_relu)
    return pl.pallas_call(
        kernel,
        out_shape=jax.ShapeDtypeStruct((n_pad, fo_pad), out_dtype),
        grid=(n_pad // tile_m, n_pad // tile_k),
        in_specs=[
            pl.BlockSpec((tile_m, 1), lambda i, k: (i, 0)),        # 1/deg rows (f32)
            pl.BlockSpec((tile_m, tile_k), lambda i, k: (i, k)),   # A 0/1 mask (int8)
            pl.BlockSpec((tile_k, fi_pad), lambda i, k: (k, 0)),   # H neighbor stream
            pl.BlockSpec((tile_m, fi_pad), lambda i, k: (i, 0)),   # H self rows
            pl.BlockSpec((fi_pad, fo_pad), lambda i, k: (0, 0)),   # W_self
            pl.BlockSpec((fi_pad, fo_pad), lambda i, k: (0, 0)),   # W_neigh
            pl.BlockSpec((1, fo_pad), lambda i, k: (0, 0)),        # bias
        ],
        out_specs=pl.BlockSpec((tile_m, fo_pad), lambda i, k: (i, 0)),
        scratch_shapes=[pltpu.VMEM((tile_m, fi_pad), jnp.float32)],
        compiler_params=pltpu.CompilerParams(
            dimension_semantics=("parallel", "arbitrary"),
            vmem_limit_bytes=vmem_limit),
        cost_estimate=cost,
    )(inv_deg, a_mask, h, h, ws_p, wn_p, b_p)


def _sage_layer_folded(a_mask, inv_deg, h, p, ws_p, b_p, *, tile_m, tile_k,
                       apply_relu, out_dtype, vmem_limit):
    n_pad = a_mask.shape[0]
    fi_pad = h.shape[1]
    fo_pad = p.shape[1]
    revisits = 1 if tile_k == n_pad else n_pad // tile_m
    cost = pl.CostEstimate(
        flops=2 * n_pad * n_pad * fo_pad + 2 * n_pad * fi_pad * fo_pad,
        transcendentals=0,
        bytes_accessed=(n_pad * n_pad
                        + 2 * revisits * n_pad * fo_pad     # streamed P
                        + 2 * n_pad * fi_pad                # self rows
                        + 2 * fi_pad * fo_pad               # W_self
                        + n_pad * fo_pad * jnp.dtype(out_dtype).itemsize))
    kernel = functools.partial(_sage_kernel_folded, apply_relu=apply_relu)
    return pl.pallas_call(
        kernel,
        out_shape=jax.ShapeDtypeStruct((n_pad, fo_pad), out_dtype),
        grid=(n_pad // tile_m, n_pad // tile_k),
        in_specs=[
            pl.BlockSpec((tile_m, 1), lambda i, k: (i, 0)),        # 1/deg rows (f32)
            pl.BlockSpec((tile_m, tile_k), lambda i, k: (i, k)),   # A 0/1 mask (int8)
            pl.BlockSpec((tile_k, fo_pad), lambda i, k: (k, 0)),   # P = H @ W_neigh
            pl.BlockSpec((tile_m, fi_pad), lambda i, k: (i, 0)),   # H self rows
            pl.BlockSpec((fi_pad, fo_pad), lambda i, k: (0, 0)),   # W_self
            pl.BlockSpec((1, fo_pad), lambda i, k: (0, 0)),        # bias
        ],
        out_specs=pl.BlockSpec((tile_m, fo_pad), lambda i, k: (i, 0)),
        scratch_shapes=[pltpu.VMEM((tile_m, fo_pad), jnp.float32)],
        compiler_params=pltpu.CompilerParams(
            dimension_semantics=("parallel", "arbitrary"),
            vmem_limit_bytes=vmem_limit),
        cost_estimate=cost,
    )(inv_deg, a_mask, p, h, ws_p, b_p)


# --------------------------- model-level API ---------------------------

def prepare_graph(adj):
    """One-time graph preprocessing (hoisted out of the per-call forward path).

    adj: dense (N, N) adjacency with adj[dst, src] != 0 for each edge.
    Returns (a_mask int8 padded, inv_deg f32 (N_pad, 1))."""
    n = adj.shape[0]
    n_pad = _round_up(n, 128)
    mask = adj > 0
    deg = jnp.clip(jnp.sum(mask, axis=1, keepdims=True).astype(jnp.float32), 1.0, None)
    inv_deg = jnp.pad(1.0 / deg, ((0, n_pad - n), (0, 0)), constant_values=1.0)
    a_mask = jnp.pad(mask, ((0, n_pad - n), (0, n_pad - n))).astype(jnp.int8)
    return a_mask, inv_deg


def prepare_params(params):
    """One-time weight preprocessing: zero-pad every feature dim to a multiple of 128
    (lane-dense tiles; math unchanged) and cast matmul operands to bf16."""
    prepped = []
    for ws, wn, b in params:
        f_in, f_out = ws.shape
        fi_pad, fo_pad = _round_up(f_in, 128), _round_up(f_out, 128)
        prepped.append((
            _pad2(jnp.asarray(ws), fi_pad, fo_pad).astype(jnp.bfloat16),          # W_self
            _pad2(jnp.asarray(wn), fi_pad, fo_pad).astype(jnp.bfloat16),          # W_neigh
            _pad2(jnp.asarray(b).reshape(1, -1), 1, fo_pad).astype(jnp.float32),  # bias
        ))
    return prepped


def graphsage_forward(a_mask, inv_deg, x, params, *, n_classes):
    """GraphSAGE forward. (a_mask, inv_deg) from prepare_graph, params from prepare_params."""
    n = x.shape[0]
    n_pad = a_mask.shape[0]
    vmem_limit = _vmem_limit_bytes()
    tile_m = _pick_tile_m(n_pad, _is_multi_tensorcore())

    fi_pad0 = params[0][0].shape[0]
    h = _pad2(x, n_pad, fi_pad0).astype(jnp.bfloat16)

    last = len(params) - 1
    for li, (ws_p, wn_p, b_p) in enumerate(params):
        fi_pad, fo_pad = ws_p.shape
        assert h.shape == (n_pad, fi_pad)
        apply_relu = li != last
        out_dtype = jnp.bfloat16 if li != last else jnp.float32

        if fo_pad <= fi_pad:
            # Reassociate: A @ (H @ W_neigh) — never widens the N-contraction,
            # keeps the aggregation in f32 all the way to the add.
            p = _project(h, wn_p, vmem_limit)
            tile_k = _pick_tile_k(n_pad, tile_m, fo_pad, vmem_limit)
            h = _sage_layer_folded(a_mask, inv_deg, h, p, ws_p, b_p,
                                   tile_m=tile_m, tile_k=tile_k,
                                   apply_relu=apply_relu, out_dtype=out_dtype,
                                   vmem_limit=vmem_limit)
        else:
            tile_k = _pick_tile_k(n_pad, tile_m, fi_pad, vmem_limit)
            h = _sage_layer(a_mask, inv_deg, h, ws_p, wn_p, b_p,
                            tile_m=tile_m, tile_k=tile_k,
                            apply_relu=apply_relu, out_dtype=out_dtype,
                            vmem_limit=vmem_limit)

    return h[:n, :n_classes]


# ----------------------------- test / demo -----------------------------

def _build_inputs(key, n, in_feats, n_hidden, n_classes, n_layers):
    k_adj, k_x, k_p = jax.random.split(key, 3)

    # Deterministic random directed graph, dense adjacency.
    adj = (jax.random.uniform(k_adj, (n, n)) < 0.06).astype(jnp.float32)
    x = jax.random.normal(k_x, (n, in_feats), dtype=jnp.float32)

    # GraphSAGE.__init__: [in->hidden] + (n_layers-1)*[hidden->hidden] + [hidden->classes]
    dims = [in_feats] + [n_hidden] * n_layers + [n_classes]
    params = []
    for fi, fo in zip(dims[:-1], dims[1:]):
        k_p, k1, k2, k3 = jax.random.split(k_p, 4)
        scale = 1.0 / jnp.sqrt(jnp.float32(fi))
        params.append((
            (jax.random.normal(k1, (fi, fo)) * scale).astype(jnp.float32),  # W_self
            (jax.random.normal(k2, (fi, fo)) * scale).astype(jnp.float32),  # W_neigh
            (jax.random.normal(k3, (fo,)) * 0.1).astype(jnp.float32),       # bias
        ))
    return adj, x, params


def _ref_forward(adj, x, params):
    deg = jnp.clip(jnp.sum(adj, axis=1, keepdims=True), 1.0, None)
    a_norm = adj / deg
    h = x
    last = len(params) - 1
    for li, (ws, wn, b) in enumerate(params):
        h = h @ ws + (a_norm @ h) @ wn + b
        if li != last:
            h = jnp.maximum(h, 0.0)
    return h


if __name__ == "__main__":
    key = jax.random.PRNGKey(0)
    forward = jax.jit(graphsage_forward, static_argnames=("n_classes",))

    configs = [
        # (N, in_feats, n_hidden, n_classes, n_layers)
        (128, 32, 64, 16, 2),    # all dims pad to 128 -> folded path, 3 layers
        (128, 256, 64, 16, 1),   # 256 -> 64: folded path shrinks the A contraction
        (256, 32, 256, 16, 1),   # 32 -> 256 first layer exercises the non-folded path
    ]
    for cfg in configs:
        n, in_feats, n_hidden, n_classes, n_layers = cfg
        key, sub = jax.random.split(key)
        adj, x, params = _build_inputs(sub, n, in_feats, n_hidden, n_classes, n_layers)

        a_mask, inv_deg = prepare_graph(adj)   # hoisted: computed once, reused per call
        params_p = prepare_params(params)      # hoisted: computed once, reused per call

        out = jax.block_until_ready(
            forward(a_mask, inv_deg, x, params_p, n_classes=n_classes))
        ref = _ref_forward(adj, x, params)

        assert out.shape == (n, n_classes), (out.shape, cfg)
        err = float(jnp.max(jnp.abs(out - ref)))
        # bf16 matmul operands with f32 accumulation and exact f32 degree scaling.
        assert jnp.allclose(out, ref, atol=5e-2, rtol=5e-2), (
            f"mismatch for cfg={cfg}: max abs err {err:.4f}")

    print("KERNEL_OK")
</pallas_src>

<mosaic_0001>
module attributes {stable_mosaic.version = 11 : i64} {
  func.func @_proj_kernel(%arg0: i32, %arg1: memref<128x128xbf16, #tpu.memory_space<vmem>>, %arg2: memref<128x128xbf16, #tpu.memory_space<vmem>>, %arg3: memref<128x128xbf16, #tpu.memory_space<vmem>>) attributes {dimension_semantics = [#tpu.dimension_semantics<parallel>], iteration_bounds = array<i64: 1>, scalar_prefetch = 0 : i64, scratch_operands = 0 : i64, tpu.core_type = #tpu.core_type<tc>, window_params = [{transform_indices = @transform_0, window_bounds = array<i64: 128, 128>}, {pipeline_mode = #tpu.pipeline_mode<synchronous>, transform_indices = @transform_1, window_bounds = array<i64: 128, 128>}, {transform_indices = @transform_2, window_bounds = array<i64: 128, 128>}]} {
    %c0 = arith.constant 0 : index
    %c0_0 = arith.constant 0 : index
    %0 = vector.load %arg1[%c0, %c0_0] : memref<128x128xbf16, #tpu.memory_space<vmem>>, vector<128x128xbf16>
    %c0_1 = arith.constant 0 : index
    %c0_2 = arith.constant 0 : index
    %1 = vector.load %arg2[%c0_1, %c0_2] : memref<128x128xbf16, #tpu.memory_space<vmem>>, vector<128x128xbf16>
    %cst = arith.constant dense<0.000000e+00> : vector<128x128xf32>
    %2 = tpu.matmul %0, %1, %cst {dimension_numbers = #tpu.dot_dimension_numbers<[1], [0], [0], [1], [0, 0, 1, 1], [], []>} : vector<128x128xbf16>, vector<128x128xbf16>, vector<128x128xf32> -> vector<128x128xf32>
    %3 = arith.truncf %2 : vector<128x128xf32> to vector<128x128xbf16>
    %c0_3 = arith.constant 0 : index
    %c0_4 = arith.constant 0 : index
    %4 = vector.load %arg3[%c0_3, %c0_4] : memref<128x128xbf16, #tpu.memory_space<vmem>>, vector<128x128xbf16>
    tpu.vector_store %arg3[%c0_3, %c0_4], %3 {strides = array<i32>} : memref<128x128xbf16, #tpu.memory_space<vmem>>, vector<128x128xbf16>,
    return
  }
  func.func @transform_0(%arg0: i32) -> (i32, i32) {
    %c0_i32 = arith.constant 0 : i32
    %c0_i32_0 = arith.constant 0 : i32
    return %arg0, %c0_i32 : i32, i32
  }
  func.func @transform_1(%arg0: i32) -> (i32, i32) {
    %c0_i32 = arith.constant 0 : i32
    %c0_i32_0 = arith.constant 0 : i32
    %c0_i32_1 = arith.constant 0 : i32
    return %c0_i32, %c0_i32_0 : i32, i32
  }
  func.func @transform_2(%arg0: i32) -> (i32, i32) {
    %c0_i32 = arith.constant 0 : i32
    %c0_i32_0 = arith.constant 0 : i32
    return %arg0, %c0_i32 : i32, i32
  }
}

module attributes {stable_mosaic.version = 11 : i64} {
  func.func @_sage_kernel_folded(%arg0: i32, %arg1: i32, %arg2: memref<128x1xf32, #tpu.memory_space<vmem>>, %arg3: memref<128x128xi8, #tpu.memory_space<vmem>>, %arg4: memref<128x128xbf16, #tpu.memory_space<vmem>>, %arg5: memref<128x128xbf16, #tpu.memory_space<vmem>>, %arg6: memref<128x128xbf16, #tpu.memory_space<vmem>>, %arg7: memref<1x128xf32, #tpu.memory_space<vmem>>, %arg8: memref<128x128xf32, #tpu.memory_space<vmem>>, %arg9: memref<128x128xf32, #tpu.memory_space<vmem>>) attributes {dimension_semantics = [#tpu.dimension_semantics<parallel>, #tpu.dimension_semantics<arbitrary>], iteration_bounds = array<i64: 1, 1>, scalar_prefetch = 0 : i64, scratch_operands = 1 : i64, tpu.core_type = #tpu.core_type<tc>, window_params = [{transform_indices = @transform_0, window_bounds = array<i64: 128, 1>}, {transform_indices = @transform_1, window_bounds = array<i64: 128, 128>}, {transform_indices = @transform_2, window_bounds = array<i64: 128, 128>}, {transform_indices = @transform_3, window_bounds = array<i64: 128, 128>}, {pipeline_mode = #tpu.pipeline_mode<synchronous>, transform_indices = @transform_4, window_bounds = array<i64: 128, 128>}, {pipeline_mode = #tpu.pipeline_mode<synchronous>, transform_indices = @transform_5, window_bounds = array<i64: 1, 128>}, {transform_indices = @transform_6, window_bounds = array<i64: 128, 128>}]} {
    %c0_i32 = arith.constant 0 : i32
    %0 = arith.cmpi eq, %arg1, %c0_i32 : i32
    %1 = arith.extui %0 : i1 to i32
    %c0_i32_0 = arith.constant 0 : i32
    %2 = arith.cmpi ne, %1, %c0_i32_0 : i32
    scf.if %2 {
      %cst_10 = arith.constant 0.000000e+00 : f32
      %13 = vector.broadcast %cst_10 : f32 to vector<128x128xf32>
      %c0_11 = arith.constant 0 : index
      %c0_12 = arith.constant 0 : index
      %14 = vector.load %arg9[%c0_11, %c0_12] : memref<128x128xf32, #tpu.memory_space<vmem>>, vector<128x128xf32>
      tpu.vector_store %arg9[%c0_11, %c0_12], %13 {strides = array<i32>} : memref<128x128xf32, #tpu.memory_space<vmem>>, vector<128x128xf32>,
    } else {
    }
    %c0 = arith.constant 0 : index
    %c0_1 = arith.constant 0 : index
    %3 = vector.load %arg9[%c0, %c0_1] : memref<128x128xf32, #tpu.memory_space<vmem>>, vector<128x128xf32>
    %c0_2 = arith.constant 0 : index
    %c0_3 = arith.constant 0 : index
    %4 = vector.load %arg3[%c0_2, %c0_3] : memref<128x128xi8, #tpu.memory_space<vmem>>, vector<128x128xi8>
    %5 = arith.sitofp %4 : vector<128x128xi8> to vector<128x128xbf16>
    %c0_4 = arith.constant 0 : index
    %c0_5 = arith.constant 0 : index
    %6 = vector.load %arg4[%c0_4, %c0_5] : memref<128x128xbf16, #tpu.memory_space<vmem>>, vector<128x128xbf16>
    %cst = arith.constant dense<0.000000e+00> : vector<128x128xf32>
    %7 = tpu.matmul %5, %6, %cst {dimension_numbers = #tpu.dot_dimension_numbers<[1], [0], [0], [1], [0, 0, 1, 1], [], []>} : vector<128x128xbf16>, vector<128x128xbf16>, vector<128x128xf32> -> vector<128x128xf32>
    %8 = arith.addf %3, %7 : vector<128x128xf32>
    %c0_6 = arith.constant 0 : index
    %c0_7 = arith.constant 0 : index
    %9 = vector.load %arg9[%c0_6, %c0_7] : memref<128x128xf32, #tpu.memory_space<vmem>>, vector<128x128xf32>
    tpu.vector_store %arg9[%c0_6, %c0_7], %8 {strides = array<i32>} : memref<128x128xf32, #tpu.memory_space<vmem>>, vector<128x128xf32>,
    %c0_i32_8 = arith.constant 0 : i32
    %10 = arith.cmpi eq, %arg1, %c0_i32_8 : i32
    %11 = arith.extui %10 : i1 to i32
    %c0_i32_9 = arith.constant 0 : i32
    %12 = arith.cmpi ne, %11, %c0_i32_9 : i32
    scf.if %12 {
      %c0_10 = arith.constant 0 : index
      %c0_11 = arith.constant 0 : index
      %13 = vector.load %arg9[%c0_10, %c0_11] : memref<128x128xf32, #tpu.memory_space<vmem>>, vector<128x128xf32>
      %c0_12 = arith.constant 0 : index
      %c0_13 = arith.constant 0 : index
      %14 = vector.load %arg2[%c0_12, %c0_13] : memref<128x1xf32, #tpu.memory_space<vmem>>, vector<128x1xf32>
      %15 = vector.broadcast %14 : vector<128x1xf32> to vector<128x128xf32>
      %16 = arith.mulf %13, %15 : vector<128x128xf32>
      %c0_14 = arith.constant 0 : index
      %c0_15 = arith.constant 0 : index
      %17 = vector.load %arg5[%c0_14, %c0_15] : memref<128x128xbf16, #tpu.memory_space<vmem>>, vector<128x128xbf16>
      %c0_16 = arith.constant 0 : index
      %c0_17 = arith.constant 0 : index
      %18 = vector.load %arg6[%c0_16, %c0_17] : memref<128x128xbf16, #tpu.memory_space<vmem>>, vector<128x128xbf16>
      %cst_18 = arith.constant dense<0.000000e+00> : vector<128x128xf32>
      %19 = tpu.matmul %17, %18, %cst_18 {dimension_numbers = #tpu.dot_dimension_numbers<[1], [0], [0], [1], [0, 0, 1, 1], [], []>} : vector<128x128xbf16>, vector<128x128xbf16>, vector<128x128xf32> -> vector<128x128xf32>
      %20 = arith.addf %16, %19 : vector<128x128xf32>
      %c0_19 = arith.constant 0 : index
      %c0_20 = arith.constant 0 : index
      %21 = vector.load %arg7[%c0_19, %c0_20] : memref<1x128xf32, #tpu.memory_space<vmem>>, vector<1x128xf32>
      %22 = vector.broadcast %21 : vector<1x128xf32> to vector<128x128xf32>
      %23 = arith.addf %20, %22 : vector<128x128xf32>
      %c0_21 = arith.constant 0 : index
      %c0_22 = arith.constant 0 : index
      %24 = vector.load %arg8[%c0_21, %c0_22] : memref<128x128xf32, #tpu.memory_space<vmem>>, vector<128x128xf32>
      tpu.vector_store %arg8[%c0_21, %c0_22], %23 {strides = array<i32>} : memref<128x128xf32, #tpu.memory_space<vmem>>, vector<128x128xf32>,
    } else {
    }
    return
  }
  func.func @transform_0(%arg0: i32, %arg1: i32) -> (i32, i32) {
    %c0_i32 = arith.constant 0 : i32
    %c0_i32_0 = arith.constant 0 : i32
    return %arg0, %c0_i32 : i32, i32
  }
  func.func @transform_1(%arg0: i32, %arg1: i32) -> (i32, i32) {
    %c0_i32 = arith.constant 0 : i32
    return %arg0, %arg1 : i32, i32
  }
  func.func @transform_2(%arg0: i32, %arg1: i32) -> (i32, i32) {
    %c0_i32 = arith.constant 0 : i32
    %c0_i32_0 = arith.constant 0 : i32
    return %arg1, %c0_i32 : i32, i32
  }
  func.func @transform_3(%arg0: i32, %arg1: i32) -> (i32, i32) {
    %c0_i32 = arith.constant 0 : i32
    %c0_i32_0 = arith.constant 0 : i32
    return %arg0, %c0_i32 : i32, i32
  }
  func.func @transform_4(%arg0: i32, %arg1: i32) -> (i32, i32) {
    %c0_i32 = arith.constant 0 : i32
    %c0_i32_0 = arith.constant 0 : i32
    %c0_i32_1 = arith.constant 0 : i32
    return %c0_i32, %c0_i32_0 : i32, i32
  }
  func.func @transform_5(%arg0: i32, %arg1: i32) -> (i32, i32) {
    %c0_i32 = arith.constant 0 : i32
    %c0_i32_0 = arith.constant 0 : i32
    %c0_i32_1 = arith.constant 0 : i32
    return %c0_i32, %c0_i32_0 : i32, i32
  }
  func.func @transform_6(%arg0: i32, %arg1: i32) -> (i32, i32) {
    %c0_i32 = arith.constant 0 : i32
    %c0_i32_0 = arith.constant 0 : i32
    return %arg0, %c0_i32 : i32, i32
  }
}

module attributes {stable_mosaic.version = 11 : i64} {
  func.func @_sage_kernel_folded(%arg0: i32, %arg1: i32, %arg2: memref<128x1xf32, #tpu.memory_space<vmem>>, %arg3: memref<128x128xi8, #tpu.memory_space<vmem>>, %arg4: memref<128x128xbf16, #tpu.memory_space<vmem>>, %arg5: memref<128x128xbf16, #tpu.memory_space<vmem>>, %arg6: memref<128x128xbf16, #tpu.memory_space<vmem>>, %arg7: memref<1x128xf32, #tpu.memory_space<vmem>>, %arg8: memref<128x128xbf16, #tpu.memory_space<vmem>>, %arg9: memref<128x128xf32, #tpu.memory_space<vmem>>) attributes {dimension_semantics = [#tpu.dimension_semantics<parallel>, #tpu.dimension_semantics<arbitrary>], iteration_bounds = array<i64: 1, 1>, scalar_prefetch = 0 : i64, scratch_operands = 1 : i64, tpu.core_type = #tpu.core_type<tc>, window_params = [{transform_indices = @transform_0, window_bounds = array<i64: 128, 1>}, {transform_indices = @transform_1, window_bounds = array<i64: 128, 128>}, {transform_indices = @transform_2, window_bounds = array<i64: 128, 128>}, {transform_indices = @transform_3, window_bounds = array<i64: 128, 128>}, {pipeline_mode = #tpu.pipeline_mode<synchronous>, transform_indices = @transform_4, window_bounds = array<i64: 128, 128>}, {pipeline_mode = #tpu.pipeline_mode<synchronous>, transform_indices = @transform_5, window_bounds = array<i64: 1, 128>}, {transform_indices = @transform_6, window_bounds = array<i64: 128, 128>}]} {
    %c0_i32 = arith.constant 0 : i32
    %0 = arith.cmpi eq, %arg1, %c0_i32 : i32
    %1 = arith.extui %0 : i1 to i32
    %c0_i32_0 = arith.constant 0 : i32
    %2 = arith.cmpi ne, %1, %c0_i32_0 : i32
    scf.if %2 {
      %cst_10 = arith.constant 0.000000e+00 : f32
      %13 = vector.broadcast %cst_10 : f32 to vector<128x128xf32>
      %c0_11 = arith.constant 0 : index
      %c0_12 = arith.constant 0 : index
      %14 = vector.load %arg9[%c0_11, %c0_12] : memref<128x128xf32, #tpu.memory_space<vmem>>, vector<128x128xf32>
      tpu.vector_store %arg9[%c0_11, %c0_12], %13 {strides = array<i32>} : memref<128x128xf32, #tpu.memory_space<vmem>>, vector<128x128xf32>,
    } else {
    }
    %c0 = arith.constant 0 : index
    %c0_1 = arith.constant 0 : index
    %3 = vector.load %arg9[%c0, %c0_1] : memref<128x128xf32, #tpu.memory_space<vmem>>, vector<128x128xf32>
    %c0_2 = arith.constant 0 : index
    %c0_3 = arith.constant 0 : index
    %4 = vector.load %arg3[%c0_2, %c0_3] : memref<128x128xi8, #tpu.memory_space<vmem>>, vector<128x128xi8>
    %5 = arith.sitofp %4 : vector<128x128xi8> to vector<128x128xbf16>
    %c0_4 = arith.constant 0 : index
    %c0_5 = arith.constant 0 : index
    %6 = vector.load %arg4[%c0_4, %c0_5] : memref<128x128xbf16, #tpu.memory_space<vmem>>, vector<128x128xbf16>
    %cst = arith.constant dense<0.000000e+00> : vector<128x128xf32>
    %7 = tpu.matmul %5, %6, %cst {dimension_numbers = #tpu.dot_dimension_numbers<[1], [0], [0], [1], [0, 0, 1, 1], [], []>} : vector<128x128xbf16>, vector<128x128xbf16>, vector<128x128xf32> -> vector<128x128xf32>
    %8 = arith.addf %3, %7 : vector<128x128xf32>
    %c0_6 = arith.constant 0 : index
    %c0_7 = arith.constant 0 : index
    %9 = vector.load %arg9[%c0_6, %c0_7] : memref<128x128xf32, #tpu.memory_space<vmem>>, vector<128x128xf32>
    tpu.vector_store %arg9[%c0_6, %c0_7], %8 {strides = array<i32>} : memref<128x128xf32, #tpu.memory_space<vmem>>, vector<128x128xf32>,
    %c0_i32_8 = arith.constant 0 : i32
    %10 = arith.cmpi eq, %arg1, %c0_i32_8 : i32
    %11 = arith.extui %10 : i1 to i32
    %c0_i32_9 = arith.constant 0 : i32
    %12 = arith.cmpi ne, %11, %c0_i32_9 : i32
    scf.if %12 {
      %c0_10 = arith.constant 0 : index
      %c0_11 = arith.constant 0 : index
      %13 = vector.load %arg9[%c0_10, %c0_11] : memref<128x128xf32, #tpu.memory_space<vmem>>, vector<128x128xf32>
      %c0_12 = arith.constant 0 : index
      %c0_13 = arith.constant 0 : index
      %14 = vector.load %arg2[%c0_12, %c0_13] : memref<128x1xf32, #tpu.memory_space<vmem>>, vector<128x1xf32>
      %15 = vector.broadcast %14 : vector<128x1xf32> to vector<128x128xf32>
      %16 = arith.mulf %13, %15 : vector<128x128xf32>
      %c0_14 = arith.constant 0 : index
      %c0_15 = arith.constant 0 : index
      %17 = vector.load %arg5[%c0_14, %c0_15] : memref<128x128xbf16, #tpu.memory_space<vmem>>, vector<128x128xbf16>
      %c0_16 = arith.constant 0 : index
      %c0_17 = arith.constant 0 : index
      %18 = vector.load %arg6[%c0_16, %c0_17] : memref<128x128xbf16, #tpu.memory_space<vmem>>, vector<128x128xbf16>
      %cst_18 = arith.constant dense<0.000000e+00> : vector<128x128xf32>
      %19 = tpu.matmul %17, %18, %cst_18 {dimension_numbers = #tpu.dot_dimension_numbers<[1], [0], [0], [1], [0, 0, 1, 1], [], []>} : vector<128x128xbf16>, vector<128x128xbf16>, vector<128x128xf32> -> vector<128x128xf32>
      %20 = arith.addf %16, %19 : vector<128x128xf32>
      %c0_19 = arith.constant 0 : index
      %c0_20 = arith.constant 0 : index
      %21 = vector.load %arg7[%c0_19, %c0_20] : memref<1x128xf32, #tpu.memory_space<vmem>>, vector<1x128xf32>
      %22 = vector.broadcast %21 : vector<1x128xf32> to vector<128x128xf32>
      %23 = arith.addf %20, %22 : vector<128x128xf32>
      %cst_21 = arith.constant 0.000000e+00 : f32
      %24 = vector.broadcast %cst_21 : f32 to vector<128x128xf32>
      %25 = arith.maximumf %23, %24 : vector<128x128xf32>
      %26 = arith.truncf %25 : vector<128x128xf32> to vector<128x128xbf16>
      %c0_22 = arith.constant 0 : index
      %c0_23 = arith.constant 0 : index
      %27 = vector.load %arg8[%c0_22, %c0_23] : memref<128x128xbf16, #tpu.memory_space<vmem>>, vector<128x128xbf16>
      tpu.vector_store %arg8[%c0_22, %c0_23], %26 {strides = array<i32>} : memref<128x128xbf16, #tpu.memory_space<vmem>>, vector<128x128xbf16>,
    } else {
    }
    return
  }
  func.func @transform_0(%arg0: i32, %arg1: i32) -> (i32, i32) {
    %c0_i32 = arith.constant 0 : i32
    %c0_i32_0 = arith.constant 0 : i32
    return %arg0, %c0_i32 : i32, i32
  }
  func.func @transform_1(%arg0: i32, %arg1: i32) -> (i32, i32) {
    %c0_i32 = arith.constant 0 : i32
    return %arg0, %arg1 : i32, i32
  }
  func.func @transform_2(%arg0: i32, %arg1: i32) -> (i32, i32) {
    %c0_i32 = arith.constant 0 : i32
    %c0_i32_0 = arith.constant 0 : i32
    return %arg1, %c0_i32 : i32, i32
  }
  func.func @transform_3(%arg0: i32, %arg1: i32) -> (i32, i32) {
    %c0_i32 = arith.constant 0 : i32
    %c0_i32_0 = arith.constant 0 : i32
    return %arg0, %c0_i32 : i32, i32
  }
  func.func @transform_4(%arg0: i32, %arg1: i32) -> (i32, i32) {
    %c0_i32 = arith.constant 0 : i32
    %c0_i32_0 = arith.constant 0 : i32
    %c0_i32_1 = arith.constant 0 : i32
    return %c0_i32, %c0_i32_0 : i32, i32
  }
  func.func @transform_5(%arg0: i32, %arg1: i32) -> (i32, i32) {
    %c0_i32 = arith.constant 0 : i32
    %c0_i32_0 = arith.constant 0 : i32
    %c0_i32_1 = arith.constant 0 : i32
    return %c0_i32, %c0_i32_0 : i32, i32
  }
  func.func @transform_6(%arg0: i32, %arg1: i32) -> (i32, i32) {
    %c0_i32 = arith.constant 0 : i32
    %c0_i32_0 = arith.constant 0 : i32
    return %arg0, %c0_i32 : i32, i32
  }
}

</mosaic_0001>

<bundles_post_ra>
// kernel: graphsage_forward.6
= control target key start
LH: loop header
LB: loop body
LE: loop exit
PB: predicated region body
PF: predicated region fallthrough
CT: control target
= control target key end

     0   :  { %s583_s1 = inlined_call_operand.vmem [shape: bf16[128,128], index: 1, kind: input, shape index: {}]   ;;  %s584_s0 = inlined_call_operand.vmem [shape: bf16[128,128], index: 0, kind: input, shape index: {}]   ;;  %s585_s2 = inlined_call_operand.vmem [shape: bf16[128,128], index: 2, kind: output, shape index: {}]  }
   0x1   :  { %v480_v0 = vld [vmem:[%s583_s1] sm:$0xff]   ;;  %v481_v1 = vld [vmem:[%s583_s1 + $0x8] sm:$0xff]   ;;  %v482_v2 = vld [vmem:[%s583_s1 + $0x10] sm:$0xff]  }
   0x2   :  { %432 = vmatprep.subr.bf16.mxu0 %v480_v0  ;;  %464 = vmatprep.subr.bf16.mxu1 %v480_v0  ;;  %v483_v3 = vld [vmem:[%s583_s1 + $0x18] sm:$0xff]   ;;  %v488_v4 = vld [vmem:[%s584_s0] sm:$0xff]   ;;  %v485_v7 = vld [vmem:[%s583_s1 + $0x28] sm:$0xff]  }
   0x3   :  { %433 = vmatpush3.bf16.msra.mxu0 %v480_v0  ;;  %472 = vmatpush3.bf16.msra.mxu1 %v480_v0  ;;  %v489_v5 = vld [vmem:[%s584_s0 + $0x20] sm:$0xff]   ;;  %v486_v8 = vld [vmem:[%s583_s1 + $0x30] sm:$0xff]   ;;  %v487_v9 = vld [vmem:[%s583_s1 + $0x38] sm:$0xff]  }
   0x4   :  { %434 = vmatprep.subr.bf16.mxu0 %v481_v1  ;;  %465 = vmatprep.subr.bf16.mxu1 %v481_v1  ;;  %v484_v6 = vld [vmem:[%s583_s1 + $0x20] sm:$0xff]   ;;  %v490_v10 = vld [vmem:[%s584_s0 + $0x8] sm:$0xff]   ;;  %v492_v12 = vld [vmem:[%s584_s0 + $0x10] sm:$0xff]  }
   0x5   :  { %448 = vmatprep.mubr.bf16.mxu0 %v488_v4  ;;  %456 = vmatprep.mubr.bf16.mxu1 %v489_v5  ;;  %v491_v11 = vld [vmem:[%s584_s0 + $0x28] sm:$0xff]   ;;  %v493_v13 = vld [vmem:[%s584_s0 + $0x30] sm:$0xff]   ;;  %v494_v14 = vld [vmem:[%s584_s0 + $0x18] sm:$0xff]  }
   0x6   :  { %v495_v15 = vld [vmem:[%s584_s0 + $0x38] sm:$0xff]  }
   0x7   :  { %435 = vmatpush3.bf16.msra.mxu0 %v481_v1  ;;  %473 = vmatpush3.bf16.msra.mxu1 %v481_v1 }
   0x8   :  { %436 = vmatprep.subr.bf16.mxu0 %v482_v2  ;;  %466 = vmatprep.subr.bf16.mxu1 %v482_v2 }
   0xb   :  { %437 = vmatpush3.bf16.msra.mxu0 %v482_v2  ;;  %474 = vmatpush3.bf16.msra.mxu1 %v482_v2 }
   0xc   :  { %438 = vmatprep.subr.bf16.mxu0 %v483_v3  ;;  %467 = vmatprep.subr.bf16.mxu1 %v483_v3 }
   0xf   :  { %439 = vmatpush3.bf16.msra.mxu0 %v483_v3  ;;  %475 = vmatpush3.bf16.msra.mxu1 %v483_v3 }
  0x10   :  { %440 = vmatprep.subr.bf16.mxu0 %v484_v6  ;;  %468 = vmatprep.subr.bf16.mxu1 %v484_v6 }
  0x13   :  { %441 = vmatpush3.bf16.msra.mxu0 %v484_v6  ;;  %476 = vmatpush3.bf16.msra.mxu1 %v484_v6 }
  0x14   :  { %442 = vmatprep.subr.bf16.mxu0 %v485_v7  ;;  %469 = vmatprep.subr.bf16.mxu1 %v485_v7 }
  0x17   :  { %443 = vmatpush3.bf16.msra.mxu0 %v485_v7  ;;  %477 = vmatpush3.bf16.msra.mxu1 %v485_v7 }
  0x18   :  { %444 = vmatprep.subr.bf16.mxu0 %v486_v8  ;;  %470 = vmatprep.subr.bf16.mxu1 %v486_v8 }
  0x1b   :  { %445 = vmatpush3.bf16.msra.mxu0 %v486_v8  ;;  %478 = vmatpush3.bf16.msra.mxu1 %v486_v8 }
  0x1c   :  { %446 = vmatprep.subr.bf16.mxu0 %v487_v9  ;;  %471 = vmatprep.subr.bf16.mxu1 %v487_v9 }
  0x1f   :  { %447 = vmatpush3.bf16.msra.mxu0 %v487_v9  ;;  %479 = vmatpush3.bf16.msra.mxu1 %v487_v9 }
  0x22   :  { %449 = vmatmul.mubr.bf16.vlgmr.msra.gmra.mrb[0].mxu0 %v490_v10  ;;  %457 = vmatmul.mubr.bf16.vlgmr.msra.gmra.mrb[0].mxu1 %v491_v11 }
  0x23   :  { %452 = vmatprep.mubr.bf16.mxu0 %v492_v12  ;;  %460 = vmatprep.mubr.bf16.mxu1 %v493_v13 }
  0x2a   :  { %453 = vmatmul.mubr.bf16.gmra.mrb[4].mxu0 %v494_v14  ;;  %461 = vmatmul.mubr.bf16.gmra.mrb[4].mxu1 %v495_v15 }
  0xf5   :  { %v450_v16 = vpop.f32.mrb[0].mxu0  ;;  %v458_v17 = vpop.f32.mrb[0].mxu1 }
  0xf6   :  { %v174_v18 = vpop.f32.mrb[1].mxu0  ;;  %v206_v19 = vpop.f32.mrb[1].mxu1 }
  0xf7   :  { %v451_v20 = vpop.f32.mrb[2].mxu0  ;;  %v459_v21 = vpop.f32.mrb[2].mxu1 }
  0xf8   :  { %v377_v22 = vpack.c.bf16 %v451_v20, %v450_v16  ;;  %v397_v23 = vpack.c.bf16 %v459_v21, %v458_v17  ;;  %v177_v24 = vpop.f32.mrb[3].mxu0  ;;  %v209_v25 = vpop.f32.mrb[3].mxu1 }
  0xf9   :  { %v372_v26 = vpack.c.bf16 %v177_v24, %v174_v18  ;;  %v392_v27 = vpack.c.bf16 %v209_v25, %v206_v19 }
  0xfa   :  { %409 = vst [vmem:[%s585_s2 + $0x8] sm:$0xff] %v377_v22   ;;  %413 = vst [vmem:[%s585_s2 + $0x28] sm:$0xff] %v397_v23  }
  0xfb   :  { %373 = vst [vmem:[%s585_s2] sm:$0xff] %v372_v26   ;;  %412 = vst [vmem:[%s585_s2 + $0x20] sm:$0xff] %v392_v27  }
  0xfd   :  { %v454_v28 = vpop.f32.mrb[4].mxu0  ;;  %v462_v29 = vpop.f32.mrb[4].mxu1 }
  0xfe   :  { %v190_v30 = vpop.f32.mrb[5].mxu0  ;;  %v222_v31 = vpop.f32.mrb[5].mxu1 }
  0xff   :  { %v455_v32 = vpop.f32.mrb[6].mxu0  ;;  %v463_v33 = vpop.f32.mrb[6].mxu1 }
 0x100   :  { %v387_v34 = vpack.c.bf16 %v455_v32, %v454_v28  ;;  %v407_v35 = vpack.c.bf16 %v463_v33, %v462_v29  ;;  %v193_v36 = vpop.f32.mrb[7].mxu0  ;;  %v225_v37 = vpop.f32.mrb[7].mxu1 }
 0x101   :  { %v382_v38 = vpack.c.bf16 %v193_v36, %v190_v30  ;;  %v402_v39 = vpack.c.bf16 %v225_v37, %v222_v31 }
 0x102   :  { %411 = vst [vmem:[%s585_s2 + $0x18] sm:$0xff] %v387_v34   ;;  %415 = vst [vmem:[%s585_s2 + $0x38] sm:$0xff] %v407_v35  }
 0x103   :  { %410 = vst [vmem:[%s585_s2 + $0x10] sm:$0xff] %v382_v38   ;;  %414 = vst [vmem:[%s585_s2 + $0x30] sm:$0xff] %v402_v39  }

// kernel: graphsage_forward.11
= control target key start
LH: loop header
LB: loop body
LE: loop exit
PB: predicated region body
PF: predicated region fallthrough
CT: control target
= control target key end

     0   :  { %v828_v1 = vmov 0   ;;  %s1068_s2 = inlined_call_operand.vmem [shape: bf16[128,128], index: 2, kind: input, shape index: {}]   ;;  %s1069_s4 = inlined_call_operand.vmem [shape: bf16[128,128], index: 4, kind: input, shape index: {}]   ;;  %s1070_s1 = inlined_call_operand.vmem [shape: s8[128,128], index: 1, kind: input, shape index: {}]   ;;  %s1071_s3 = inlined_call_operand.vmem [shape: bf16[128,128], index: 3, kind: input, shape index: {}]   ;;  %s1072_s0 = inlined_call_operand.vmem [shape: f32[128,1], index: 0, kind: input, shape index: {}]   ;;  %s1073_s5 = inlined_call_operand.vmem [shape: f32[1,128], index: 5, kind: input, shape index: {}]   ;;  %s1074_s6 = inlined_call_operand.vmem [shape: f32[128,128], index: 6, kind: output, shape index: {}]  }
   0x1   :  { %v804_v0 = vld [vmem:[%s1068_s2] sm:$0xff]   ;;  %803 = vset.pattern.permute.xlu1 %v828_v1  ;;  %802 = vset.pattern.permute.xlu0 %v828_v1  ;;  %v806_v3 = vld [vmem:[%s1068_s2 + $0x8] sm:$0xff]   ;;  %v808_v5 = vld [vmem:[%s1068_s2 + $0x10] sm:$0xff]  }
   0x2   :  { %v805_v2 = vld [vmem:[%s1069_s4] sm:$0xff]   ;;  %737 = vmatprep.subr.bf16.mxu0 %v804_v0  ;;  %v807_v4 = vld [vmem:[%s1069_s4 + $0x8] sm:$0xff]   ;;  %v809_v6 = vld [vmem:[%s1069_s4 + $0x10] sm:$0xff]  }
   0x3   :  { %769 = vmatprep.subr.bf16.mxu1 %v805_v2  ;;  %738 = vmatpush3.bf16.msra.mxu0 %v804_v0  ;;  %v810_v7 = vld [vmem:[%s1068_s2 + $0x18] sm:$0xff]   ;;  %v812_v9 = vld [vmem:[%s1068_s2 + $0x20] sm:$0xff]   ;;  %v814_v11 = vld [vmem:[%s1068_s2 + $0x28] sm:$0xff]  }
   0x4   :  { %770 = vmatpush3.bf16.msra.mxu1 %v805_v2  ;;  %739 = vmatprep.subr.bf16.mxu0 %v806_v3  ;;  %v811_v8 = vld [vmem:[%s1069_s4 + $0x18] sm:$0xff]   ;;  %v813_v10 = vld [vmem:[%s1069_s4 + $0x20] sm:$0xff]   ;;  %v815_v12 = vld [vmem:[%s1069_s4 + $0x28] sm:$0xff]  }
   0x5   :  { %771 = vmatprep.subr.bf16.mxu1 %v807_v4  ;;  %v60_v13 = vld [vmem:[%s1070_s1] sm:$0xff]  ;;  %v816_v16 = vld [vmem:[%s1068_s2 + $0x30] sm:$0xff]   ;;  %v818_v18 = vld [vmem:[%s1068_s2 + $0x38] sm:$0xff]  }
   0x6   :  { %v64_v14 = vunpack.c.l.s8.bf16 %v60_v13  ;;  %v820_v15 = vld [vmem:[%s1071_s3] sm:$0xff]   ;;  %v817_v17 = vld [vmem:[%s1069_s4 + $0x30] sm:$0xff]   ;;  %v819_v19 = vld [vmem:[%s1069_s4 + $0x38] sm:$0xff]   ;;  %v65_v25 = vunpack.c.h.s8.bf16 %v60_v13 }
   0x7   :  { %740 = vmatpush3.bf16.msra.mxu0 %v806_v3  ;;  %785 = vmatprep.mubr.bf16.mxu1 %v820_v15  ;;  %v286_v20 = vld [vmem:[%s1072_s0 + $0x10] sm:$0xff]  ;;  %v284_v21 = vld [vmem:[%s1072_s0] sm:$0xff]  ;;  %v287_v22 = vld [vmem:[%s1072_s0 + $0x18] sm:$0xff] }
   0x8   :  { %772 = vmatpush3.bf16.msra.mxu1 %v807_v4  ;;  %741 = vmatprep.subr.bf16.mxu0 %v808_v5  ;;  %v285_v23 = vld [vmem:[%s1072_s0 + $0x8] sm:$0xff]  ;;  %v822_v29 = vld [vmem:[%s1071_s3 + $0x10] sm:$0xff]   ;;  %v288_v30 = vld [vmem:[%s1072_s0 + $0x20] sm:$0xff] }
   0x9   :  { %773 = vmatprep.subr.bf16.mxu1 %v809_v6  ;;  %753 = vmatprep.mubr.bf16.mxu0 %v64_v14  ;;  %v61_v24 = vld [vmem:[%s1070_s1 + $0x8] sm:$0xff]  ;;  %v291_v31 = vld [vmem:[%s1072_s0 + $0x38] sm:$0xff]  ;;  %v62_v32 = vld [vmem:[%s1070_s1 + $0x10] sm:$0xff] }
   0xa   :  { %312 = vperm.xlu1 %803, %v286_v20   ;;  %302 = vperm.xlu0 %802, %v284_v21   ;;  %v821_v26 = vld [vmem:[%s1071_s3 + $0x8] sm:$0xff]   ;;  %v66_v27 = vunpack.c.l.s8.bf16 %v61_v24  ;;  %v290_v33 = vld [vmem:[%s1072_s0 + $0x30] sm:$0xff]  ;;  %v67_v34 = vunpack.c.h.s8.bf16 %v61_v24  ;;  %v823_v35 = vld [vmem:[%s1071_s3 + $0x18] sm:$0xff]   ;;  %v68_v36 = vunpack.c.l.s8.bf16 %v62_v32  ;;  %v69_v43 = vunpack.c.h.s8.bf16 %v62_v32 }
   0xb   :  { %742 = vmatpush3.bf16.msra.mxu0 %v808_v5  ;;  %v289_v28 = vld [vmem:[%s1072_s0 + $0x28] sm:$0xff]  ;;  %v824_v38 = vld [vmem:[%s1071_s3 + $0x20] sm:$0xff]   ;;  %v295_v40 = vld [vmem:[%s1072_s0 + $0x58] sm:$0xff] }
   0xc   :  { %774 = vmatpush3.bf16.msra.mxu1 %v809_v6  ;;  %743 = vmatprep.subr.bf16.mxu0 %v810_v7  ;;  %v293_v37 = vld [vmem:[%s1072_s0 + $0x48] sm:$0xff]  ;;  %v292_v39 = vld [vmem:[%s1072_s0 + $0x40] sm:$0xff]  ;;  %v63_v41 = vld [vmem:[%s1070_s1 + $0x18] sm:$0xff] }
   0xd   :  { %775 = vmatprep.subr.bf16.mxu1 %v811_v8  ;;  %v294_v42 = vld [vmem:[%s1072_s0 + $0x50] sm:$0xff]  ;;  %v825_v44 = vld [vmem:[%s1071_s3 + $0x28] sm:$0xff]   ;;  %v70_v45 = vunpack.c.l.s8.bf16 %v63_v41  ;;  %v296_v48 = vld [vmem:[%s1072_s0 + $0x60] sm:$0xff]  ;;  %v71_v51 = vunpack.c.h.s8.bf16 %v63_v41 }
   0xe   :  { %317 = vperm.xlu1 %803, %v287_v22   ;;  %307 = vperm.xlu0 %802, %v285_v23   ;;  %v297_v46 = vld [vmem:[%s1072_s0 + $0x68] sm:$0xff]  ;;  %v826_v47 = vld [vmem:[%s1071_s3 + $0x30] sm:$0xff]   ;;  %v299_v49 = vld [vmem:[%s1072_s0 + $0x78] sm:$0xff] }
   0xf   :  { %744 = vmatpush3.bf16.msra.mxu0 %v810_v7  ;;  %v298_v50 = vld [vmem:[%s1072_s0 + $0x70] sm:$0xff]  ;;  %v827_v52 = vld [vmem:[%s1071_s3 + $0x38] sm:$0xff]   ;;  %v1001_v3 = vld [vmem:[%s1073_s5] ss:$0 sm:$0xff] }
  0x10   :  { %776 = vmatpush3.bf16.msra.mxu1 %v811_v8  ;;  %745 = vmatprep.subr.bf16.mxu0 %v812_v9 }
  0x11   :  { %777 = vmatprep.subr.bf16.mxu1 %v813_v10 }
  0x12   :  { %327 = vperm.xlu1 %803, %v289_v28   ;;  %322 = vperm.xlu0 %802, %v288_v30  }
  0x13   :  { %746 = vmatpush3.bf16.msra.mxu0 %v812_v9 }
  0x14   :  { %778 = vmatpush3.bf16.msra.mxu1 %v813_v10  ;;  %747 = vmatprep.subr.bf16.mxu0 %v814_v11 }
  0x15   :  { %779 = vmatprep.subr.bf16.mxu1 %v815_v12 }
  0x16   :  { %337 = vperm.xlu1 %803, %v291_v31   ;;  %332 = vperm.xlu0 %802, %v290_v33  }
  0x17   :  { %748 = vmatpush3.bf16.msra.mxu0 %v814_v11 }
  0x18   :  { %780 = vmatpush3.bf16.msra.mxu1 %v815_v12  ;;  %749 = vmatprep.subr.bf16.mxu0 %v816_v16 }
  0x19   :  { %781 = vmatprep.subr.bf16.mxu1 %v817_v17 }
  0x1a   :  { %347 = vperm.xlu1 %803, %v293_v37   ;;  %342 = vperm.xlu0 %802, %v292_v39  }
  0x1b   :  { %750 = vmatpush3.bf16.msra.mxu0 %v816_v16 }
  0x1c   :  { %782 = vmatpush3.bf16.msra.mxu1 %v817_v17  ;;  %751 = vmatprep.subr.bf16.mxu0 %v818_v18 }
  0x1d   :  { %783 = vmatprep.subr.bf16.mxu1 %v819_v19 }
  0x1e   :  { %357 = vperm.xlu1 %803, %v295_v40   ;;  %352 = vperm.xlu0 %802, %v294_v42  }
  0x1f   :  { %752 = vmatpush3.bf16.msra.mxu0 %v818_v18 }
  0x20   :  { %784 = vmatpush3.bf16.msra.mxu1 %v819_v19 }
  0x22   :  { %754 = vmatmul.mubr.bf16.vlgmr.msra.gmra.mrb[0].mxu0 %v65_v25  ;;  %367 = vperm.xlu1 %803, %v297_v46  }
  0x23   :  { %786 = vmatmul.mubr.bf16.vlgmr.msra.gmra.mrb[0].mxu1 %v821_v26  ;;  %757 = vmatprep.mubr.bf16.mxu0 %v66_v27 }
  0x24   :  { %789 = vmatprep.mubr.bf16.mxu1 %v822_v29  ;;  %362 = vperm.xlu0 %802, %v296_v48  }
  0x26   :  { %377 = vperm.xlu1 %803, %v299_v49  }
  0x28   :  { %372 = vperm.xlu0 %802, %v298_v50  }
  0x2a   :  { %758 = vmatmul.mubr.bf16.gmra.mrb[4].mxu0 %v67_v34 }
  0x2b   :  { %790 = vmatmul.mubr.bf16.gmra.mrb[4].mxu1 %v823_v35  ;;  %761 = vmatprep.mubr.bf16.mxu0 %v68_v36 }
  0x2c   :  { %793 = vmatprep.mubr.bf16.mxu1 %v824_v38 }
  0x32   :  { %762 = vmatmul.mubr.bf16.gmra.mrb[8].mxu0 %v69_v43 }
  0x33   :  { %794 = vmatmul.mubr.bf16.gmra.mrb[8].mxu1 %v825_v44  ;;  %765 = vmatprep.mubr.bf16.mxu0 %v70_v45 }
  0x34   :  { %797 = vmatprep.mubr.bf16.mxu1 %v826_v47 }
  0x3a   :  { %766 = vmatmul.mubr.bf16.gmra.mrb[12].mxu0 %v71_v51 }
  0x3b   :  { %798 = vmatmul.mubr.bf16.gmra.mrb[12].mxu1 %v827_v52 }
  0x89   :  { %v313_v53 = vpop.permute.xlu1 %312  ;;  %v303_v54 = vpop.permute.xlu0 %302 }
  0x8d   :  { %v318_v55 = vpop.permute.xlu1 %317  ;;  %v308_v56 = vpop.permute.xlu0 %307 }
  0x91   :  { %v328_v57 = vpop.permute.xlu1 %327  ;;  %v323_v58 = vpop.permute.xlu0 %322 }
  0x95   :  { %v338_v59 = vpop.permute.xlu1 %337  ;;  %v333_v60 = vpop.permute.xlu0 %332 }
  0x99   :  { %v996_v61 = vpop.permute.xlu1 %347  ;;  %v343_v62 = vpop.permute.xlu0 %342 }
  0x9d   :  { %v358_v18 = vpop.permute.xlu1 %357  ;;  %v353_v20 = vpop.permute.xlu0 %352 }
  0xa1   :  { %v368_v40 = vpop.permute.xlu1 %367 }
  0xa3   :  { %v363_v42 = vpop.permute.xlu0 %362 }
  0xf5   :  { %v755_v63 = vpop.f32.mrb[0].mxu0 }
  0xf6   :  { %v382_v0 = vmul.f32 %v755_v63, %v313_v53  ;;  %v787_v1 = vpop.f32.mrb[0].mxu1  ;;  %v170_v2 = vpop.f32.mrb[1].mxu0 }
  0xf7   :  { %v380_v4 = vmul.f32 %v303_v54, %v170_v2  ;;  %v558_v5 = vpop.f32.mrb[1].mxu1  ;;  %v756_v6 = vpop.f32.mrb[2].mxu0 }
  0xf8   :  { %v623_v7 = vadd.f32 %v787_v1, %v382_v0  ;;  %v383_v8 = vmul.f32 %v756_v6, %v318_v55  ;;  %v788_v9 = vpop.f32.mrb[2].mxu1  ;;  %v173_v10 = vpop.f32.mrb[3].mxu0 }
  0xf9   :  { %v621_v11 = vadd.f32 %v558_v5, %v380_v4  ;;  %v381_v12 = vmul.f32 %v308_v56, %v173_v10  ;;  %v561_v13 = vpop.f32.mrb[3].mxu1  ;;  %v378_v0 = vpop.permute.xlu1 %377 }
  0xfa   :  { %v646_v14 = vadd.f32 %v1001_v3, %v623_v7  ;;  %v624_v15 = vadd.f32 %v788_v9, %v383_v8  ;;  %v373_v1 = vpop.permute.xlu0 %372 }
  0xfb   :  { %v644_v16 = vadd.f32 %v1001_v3, %v621_v11  ;;  %v622_v17 = vadd.f32 %v561_v13, %v381_v12 }
  0xfc   :  { %662 = vst [vmem:[%s1074_s6 + $0x10] sm:$0xff] %v646_v14  ;;  %v647_v19 = vadd.f32 %v1001_v3, %v624_v15 }
  0xfd   :  { %660 = vst [vmem:[%s1074_s6] sm:$0xff] %v644_v16  ;;  %v645_v21 = vadd.f32 %v1001_v3, %v622_v17  ;;  %v759_v22 = vpop.f32.mrb[4].mxu0 }
  0xfe   :  { %663 = vst [vmem:[%s1074_s6 + $0x18] sm:$0xff] %v647_v19  ;;  %v386_v23 = vmul.f32 %v759_v22, %v333_v60  ;;  %v791_v24 = vpop.f32.mrb[4].mxu1  ;;  %v186_v25 = vpop.f32.mrb[5].mxu0 }
  0xff   :  { %661 = vst [vmem:[%s1074_s6 + $0x8] sm:$0xff] %v645_v21  ;;  %v384_v26 = vmul.f32 %v323_v58, %v186_v25  ;;  %v574_v27 = vpop.f32.mrb[5].mxu1  ;;  %v760_v28 = vpop.f32.mrb[6].mxu0 }
 0x100   :  { %v627_v29 = vadd.f32 %v791_v24, %v386_v23  ;;  %v387_v30 = vmul.f32 %v760_v28, %v338_v59  ;;  %v792_v31 = vpop.f32.mrb[6].mxu1  ;;  %v189_v32 = vpop.f32.mrb[7].mxu0 }
 0x101   :  { %v625_v33 = vadd.f32 %v574_v27, %v384_v26  ;;  %v385_v34 = vmul.f32 %v328_v57, %v189_v32  ;;  %v577_v35 = vpop.f32.mrb[7].mxu1 }
 0x102   :  { %v650_v36 = vadd.f32 %v1001_v3, %v627_v29  ;;  %v628_v37 = vadd.f32 %v792_v31, %v387_v30 }
 0x103   :  { %v648_v38 = vadd.f32 %v1001_v3, %v625_v33  ;;  %v626_v39 = vadd.f32 %v577_v35, %v385_v34 }
 0x104   :  { %666 = vst [vmem:[%s1074_s6 + $0x30] sm:$0xff] %v650_v36  ;;  %v651_v41 = vadd.f32 %v1001_v3, %v628_v37 }
 0x105   :  { %664 = vst [vmem:[%s1074_s6 + $0x20] sm:$0xff] %v648_v38  ;;  %v649_v43 = vadd.f32 %v1001_v3, %v626_v39  ;;  %v763_v44 = vpop.f32.mrb[8].mxu0 }
 0x106   :  { %667 = vst [vmem:[%s1074_s6 + $0x38] sm:$0xff] %v651_v41  ;;  %v390_v45 = vmul.f32 %v763_v44, %v353_v20  ;;  %v795_v46 = vpop.f32.mrb[8].mxu1  ;;  %v202_v47 = vpop.f32.mrb[9].mxu0 }
 0x107   :  { %665 = vst [vmem:[%s1074_s6 + $0x28] sm:$0xff] %v649_v43  ;;  %v388_v48 = vmul.f32 %v343_v62, %v202_v47  ;;  %v590_v49 = vpop.f32.mrb[9].mxu1  ;;  %v764_v50 = vpop.f32.mrb[10].mxu0 }
 0x108   :  { %v631_v51 = vadd.f32 %v795_v46, %v390_v45  ;;  %v391_v52 = vmul.f32 %v764_v50, %v358_v18  ;;  %v796_v53 = vpop.f32.mrb[10].mxu1  ;;  %v205_v54 = vpop.f32.mrb[11].mxu0 }
 0x109   :  { %v629_v55 = vadd.f32 %v590_v49, %v388_v48  ;;  %v389_v56 = vmul.f32 %v996_v61, %v205_v54  ;;  %v593_v57 = vpop.f32.mrb[11].mxu1 }
 0x10a   :  { %v654_v58 = vadd.f32 %v1001_v3, %v631_v51  ;;  %v632_v59 = vadd.f32 %v796_v53, %v391_v52 }
 0x10b   :  { %v652_v60 = vadd.f32 %v1001_v3, %v629_v55  ;;  %v630_v63 = vadd.f32 %v593_v57, %v389_v56 }
 0x10c   :  { %670 = vst [vmem:[%s1074_s6 + $0x50] sm:$0xff] %v654_v58  ;;  %v655_v62 = vadd.f32 %v1001_v3, %v632_v59 }
 0x10d   :  { %668 = vst [vmem:[%s1074_s6 + $0x40] sm:$0xff] %v652_v60  ;;  %v653_v61 = vadd.f32 %v1001_v3, %v630_v63  ;;  %v767_v2 = vpop.f32.mrb[12].mxu0 }
 0x10e   :  { %671 = vst [vmem:[%s1074_s6 + $0x58] sm:$0xff] %v655_v62  ;;  %v394_v4 = vmul.f32 %v767_v2, %v373_v1  ;;  %v799_v5 = vpop.f32.mrb[12].mxu1  ;;  %v218_v6 = vpop.f32.mrb[13].mxu0 }
 0x10f   :  { %669 = vst [vmem:[%s1074_s6 + $0x48] sm:$0xff] %v653_v61  ;;  %v392_v7 = vmul.f32 %v363_v42, %v218_v6  ;;  %v606_v8 = vpop.f32.mrb[13].mxu1  ;;  %v768_v9 = vpop.f32.mrb[14].mxu0 }
 0x110   :  { %v635_v10 = vadd.f32 %v799_v5, %v394_v4  ;;  %v395_v11 = vmul.f32 %v768_v9, %v378_v0  ;;  %v800_v12 = vpop.f32.mrb[14].mxu1  ;;  %v221_v13 = vpop.f32.mrb[15].mxu0 }
 0x111   :  { %v633_v14 = vadd.f32 %v606_v8, %v392_v7  ;;  %v393_v15 = vmul.f32 %v368_v40, %v221_v13  ;;  %v609_v16 = vpop.f32.mrb[15].mxu1 }
 0x112   :  { %v658_v17 = vadd.f32 %v1001_v3, %v635_v10  ;;  %v636_v18 = vadd.f32 %v800_v12, %v395_v11 }
 0x113   :  { %v656_v19 = vadd.f32 %v1001_v3, %v633_v14  ;;  %v634_v20 = vadd.f32 %v609_v16, %v393_v15 }
 0x114   :  { %674 = vst [vmem:[%s1074_s6 + $0x70] sm:$0xff] %v658_v17  ;;  %v659_v21 = vadd.f32 %v1001_v3, %v636_v18 }
 0x115   :  { %672 = vst [vmem:[%s1074_s6 + $0x60] sm:$0xff] %v656_v19  ;;  %v657_v22 = vadd.f32 %v1001_v3, %v634_v20 }
 0x116   :  { %675 = vst [vmem:[%s1074_s6 + $0x78] sm:$0xff] %v659_v21 }
 0x117   :  { %673 = vst [vmem:[%s1074_s6 + $0x68] sm:$0xff] %v657_v22 }

// kernel: graphsage_forward.7
= control target key start
LH: loop header
LB: loop body
LE: loop exit
PB: predicated region body
PF: predicated region fallthrough
CT: control target
= control target key end

     0   :  { %v987_v1 = vmov 0   ;;  %s1206_s2 = inlined_call_operand.vmem [shape: bf16[128,128], index: 2, kind: input, shape index: {}]   ;;  %s1207_s4 = inlined_call_operand.vmem [shape: bf16[128,128], index: 4, kind: input, shape index: {}]   ;;  %s1208_s1 = inlined_call_operand.vmem [shape: s8[128,128], index: 1, kind: input, shape index: {}]   ;;  %s1209_s3 = inlined_call_operand.vmem [shape: bf16[128,128], index: 3, kind: input, shape index: {}]   ;;  %s1210_s0 = inlined_call_operand.vmem [shape: f32[128,1], index: 0, kind: input, shape index: {}]   ;;  %s1211_s5 = inlined_call_operand.vmem [shape: f32[1,128], index: 5, kind: input, shape index: {}]   ;;  %s1212_s6 = inlined_call_operand.vmem [shape: bf16[128,128], index: 6, kind: output, shape index: {}]  }
   0x1   :  { %v963_v0 = vld [vmem:[%s1206_s2] sm:$0xff]   ;;  %962 = vset.pattern.permute.xlu1 %v987_v1  ;;  %961 = vset.pattern.permute.xlu0 %v987_v1  ;;  %v965_v3 = vld [vmem:[%s1206_s2 + $0x8] sm:$0xff]   ;;  %v967_v5 = vld [vmem:[%s1206_s2 + $0x10] sm:$0xff]  }
   0x2   :  { %v964_v2 = vld [vmem:[%s1207_s4] sm:$0xff]   ;;  %896 = vmatprep.subr.bf16.mxu0 %v963_v0  ;;  %v966_v4 = vld [vmem:[%s1207_s4 + $0x8] sm:$0xff]   ;;  %v968_v6 = vld [vmem:[%s1207_s4 + $0x10] sm:$0xff]  }
   0x3   :  { %928 = vmatprep.subr.bf16.mxu1 %v964_v2  ;;  %897 = vmatpush3.bf16.msra.mxu0 %v963_v0  ;;  %v969_v7 = vld [vmem:[%s1206_s2 + $0x18] sm:$0xff]   ;;  %v971_v9 = vld [vmem:[%s1206_s2 + $0x20] sm:$0xff]   ;;  %v973_v11 = vld [vmem:[%s1206_s2 + $0x28] sm:$0xff]  }
   0x4   :  { %929 = vmatpush3.bf16.msra.mxu1 %v964_v2  ;;  %898 = vmatprep.subr.bf16.mxu0 %v965_v3  ;;  %v970_v8 = vld [vmem:[%s1207_s4 + $0x18] sm:$0xff]   ;;  %v972_v10 = vld [vmem:[%s1207_s4 + $0x20] sm:$0xff]   ;;  %v974_v12 = vld [vmem:[%s1207_s4 + $0x28] sm:$0xff]  }
   0x5   :  { %930 = vmatprep.subr.bf16.mxu1 %v966_v4  ;;  %v60_v13 = vld [vmem:[%s1208_s1] sm:$0xff]  ;;  %v975_v16 = vld [vmem:[%s1206_s2 + $0x30] sm:$0xff]   ;;  %v977_v18 = vld [vmem:[%s1206_s2 + $0x38] sm:$0xff]  }
   0x6   :  { %v64_v14 = vunpack.c.l.s8.bf16 %v60_v13  ;;  %v979_v15 = vld [vmem:[%s1209_s3] sm:$0xff]   ;;  %v976_v17 = vld [vmem:[%s1207_s4 + $0x30] sm:$0xff]   ;;  %v978_v19 = vld [vmem:[%s1207_s4 + $0x38] sm:$0xff]   ;;  %v65_v25 = vunpack.c.h.s8.bf16 %v60_v13 }
   0x7   :  { %899 = vmatpush3.bf16.msra.mxu0 %v965_v3  ;;  %944 = vmatprep.mubr.bf16.mxu1 %v979_v15  ;;  %v286_v20 = vld [vmem:[%s1210_s0 + $0x10] sm:$0xff]  ;;  %v284_v21 = vld [vmem:[%s1210_s0] sm:$0xff]  ;;  %v287_v22 = vld [vmem:[%s1210_s0 + $0x18] sm:$0xff] }
   0x8   :  { %931 = vmatpush3.bf16.msra.mxu1 %v966_v4  ;;  %900 = vmatprep.subr.bf16.mxu0 %v967_v5  ;;  %v285_v23 = vld [vmem:[%s1210_s0 + $0x8] sm:$0xff]  ;;  %v981_v29 = vld [vmem:[%s1209_s3 + $0x10] sm:$0xff]   ;;  %v288_v30 = vld [vmem:[%s1210_s0 + $0x20] sm:$0xff] }
   0x9   :  { %932 = vmatprep.subr.bf16.mxu1 %v968_v6  ;;  %912 = vmatprep.mubr.bf16.mxu0 %v64_v14  ;;  %v61_v24 = vld [vmem:[%s1208_s1 + $0x8] sm:$0xff]  ;;  %v291_v31 = vld [vmem:[%s1210_s0 + $0x38] sm:$0xff]  ;;  %v62_v32 = vld [vmem:[%s1208_s1 + $0x10] sm:$0xff] }
   0xa   :  { %312 = vperm.xlu1 %962, %v286_v20   ;;  %302 = vperm.xlu0 %961, %v284_v21   ;;  %v980_v26 = vld [vmem:[%s1209_s3 + $0x8] sm:$0xff]   ;;  %v66_v27 = vunpack.c.l.s8.bf16 %v61_v24  ;;  %v290_v33 = vld [vmem:[%s1210_s0 + $0x30] sm:$0xff]  ;;  %v67_v34 = vunpack.c.h.s8.bf16 %v61_v24  ;;  %v982_v35 = vld [vmem:[%s1209_s3 + $0x18] sm:$0xff]   ;;  %v68_v36 = vunpack.c.l.s8.bf16 %v62_v32  ;;  %v69_v43 = vunpack.c.h.s8.bf16 %v62_v32 }
   0xb   :  { %901 = vmatpush3.bf16.msra.mxu0 %v967_v5  ;;  %v289_v28 = vld [vmem:[%s1210_s0 + $0x28] sm:$0xff]  ;;  %v983_v38 = vld [vmem:[%s1209_s3 + $0x20] sm:$0xff]   ;;  %v295_v40 = vld [vmem:[%s1210_s0 + $0x58] sm:$0xff] }
   0xc   :  { %933 = vmatpush3.bf16.msra.mxu1 %v968_v6  ;;  %902 = vmatprep.subr.bf16.mxu0 %v969_v7  ;;  %v293_v37 = vld [vmem:[%s1210_s0 + $0x48] sm:$0xff]  ;;  %v292_v39 = vld [vmem:[%s1210_s0 + $0x40] sm:$0xff]  ;;  %v63_v41 = vld [vmem:[%s1208_s1 + $0x18] sm:$0xff] }
   0xd   :  { %934 = vmatprep.subr.bf16.mxu1 %v970_v8  ;;  %v294_v42 = vld [vmem:[%s1210_s0 + $0x50] sm:$0xff]  ;;  %v984_v44 = vld [vmem:[%s1209_s3 + $0x28] sm:$0xff]   ;;  %v70_v45 = vunpack.c.l.s8.bf16 %v63_v41  ;;  %v296_v48 = vld [vmem:[%s1210_s0 + $0x60] sm:$0xff]  ;;  %v71_v51 = vunpack.c.h.s8.bf16 %v63_v41 }
   0xe   :  { %317 = vperm.xlu1 %962, %v287_v22   ;;  %307 = vperm.xlu0 %961, %v285_v23   ;;  %v297_v46 = vld [vmem:[%s1210_s0 + $0x68] sm:$0xff]  ;;  %v985_v47 = vld [vmem:[%s1209_s3 + $0x30] sm:$0xff]   ;;  %v299_v49 = vld [vmem:[%s1210_s0 + $0x78] sm:$0xff] }
   0xf   :  { %903 = vmatpush3.bf16.msra.mxu0 %v969_v7  ;;  %v298_v50 = vld [vmem:[%s1210_s0 + $0x70] sm:$0xff]  ;;  %v986_v52 = vld [vmem:[%s1209_s3 + $0x38] sm:$0xff]   ;;  %v1162_v3 = vld [vmem:[%s1211_s5] ss:$0 sm:$0xff] }
  0x10   :  { %935 = vmatpush3.bf16.msra.mxu1 %v970_v8  ;;  %904 = vmatprep.subr.bf16.mxu0 %v971_v9 }
  0x11   :  { %936 = vmatprep.subr.bf16.mxu1 %v972_v10 }
  0x12   :  { %327 = vperm.xlu1 %962, %v289_v28   ;;  %322 = vperm.xlu0 %961, %v288_v30  }
  0x13   :  { %905 = vmatpush3.bf16.msra.mxu0 %v971_v9 }
  0x14   :  { %937 = vmatpush3.bf16.msra.mxu1 %v972_v10  ;;  %906 = vmatprep.subr.bf16.mxu0 %v973_v11 }
  0x15   :  { %938 = vmatprep.subr.bf16.mxu1 %v974_v12 }
  0x16   :  { %337 = vperm.xlu1 %962, %v291_v31   ;;  %332 = vperm.xlu0 %961, %v290_v33  }
  0x17   :  { %907 = vmatpush3.bf16.msra.mxu0 %v973_v11 }
  0x18   :  { %939 = vmatpush3.bf16.msra.mxu1 %v974_v12  ;;  %908 = vmatprep.subr.bf16.mxu0 %v975_v16 }
  0x19   :  { %940 = vmatprep.subr.bf16.mxu1 %v976_v17 }
  0x1a   :  { %347 = vperm.xlu1 %962, %v293_v37   ;;  %342 = vperm.xlu0 %961, %v292_v39  }
  0x1b   :  { %909 = vmatpush3.bf16.msra.mxu0 %v975_v16 }
  0x1c   :  { %941 = vmatpush3.bf16.msra.mxu1 %v976_v17  ;;  %910 = vmatprep.subr.bf16.mxu0 %v977_v18 }
  0x1d   :  { %942 = vmatprep.subr.bf16.mxu1 %v978_v19 }
  0x1e   :  { %357 = vperm.xlu1 %962, %v295_v40   ;;  %352 = vperm.xlu0 %961, %v294_v42  }
  0x1f   :  { %911 = vmatpush3.bf16.msra.mxu0 %v977_v18 }
  0x20   :  { %943 = vmatpush3.bf16.msra.mxu1 %v978_v19 }
  0x22   :  { %913 = vmatmul.mubr.bf16.vlgmr.msra.gmra.mrb[0].mxu0 %v65_v25  ;;  %367 = vperm.xlu1 %962, %v297_v46  }
  0x23   :  { %945 = vmatmul.mubr.bf16.vlgmr.msra.gmra.mrb[0].mxu1 %v980_v26  ;;  %916 = vmatprep.mubr.bf16.mxu0 %v66_v27 }
  0x24   :  { %948 = vmatprep.mubr.bf16.mxu1 %v981_v29  ;;  %362 = vperm.xlu0 %961, %v296_v48  }
  0x26   :  { %377 = vperm.xlu1 %962, %v299_v49  }
  0x28   :  { %372 = vperm.xlu0 %961, %v298_v50  }
  0x2a   :  { %917 = vmatmul.mubr.bf16.gmra.mrb[4].mxu0 %v67_v34 }
  0x2b   :  { %949 = vmatmul.mubr.bf16.gmra.mrb[4].mxu1 %v982_v35  ;;  %920 = vmatprep.mubr.bf16.mxu0 %v68_v36 }
  0x2c   :  { %952 = vmatprep.mubr.bf16.mxu1 %v983_v38 }
  0x32   :  { %921 = vmatmul.mubr.bf16.gmra.mrb[8].mxu0 %v69_v43 }
  0x33   :  { %953 = vmatmul.mubr.bf16.gmra.mrb[8].mxu1 %v984_v44  ;;  %924 = vmatprep.mubr.bf16.mxu0 %v70_v45 }
  0x34   :  { %956 = vmatprep.mubr.bf16.mxu1 %v985_v47 }
  0x3a   :  { %925 = vmatmul.mubr.bf16.gmra.mrb[12].mxu0 %v71_v51 }
  0x3b   :  { %957 = vmatmul.mubr.bf16.gmra.mrb[12].mxu1 %v986_v52 }
  0x89   :  { %v313_v53 = vpop.permute.xlu1 %312  ;;  %v303_v54 = vpop.permute.xlu0 %302 }
  0x8d   :  { %v318_v55 = vpop.permute.xlu1 %317  ;;  %v308_v56 = vpop.permute.xlu0 %307 }
  0x91   :  { %v328_v57 = vpop.permute.xlu1 %327  ;;  %v323_v58 = vpop.permute.xlu0 %322 }
  0x95   :  { %v338_v59 = vpop.permute.xlu1 %337  ;;  %v333_v60 = vpop.permute.xlu0 %332 }
  0x99   :  { %v1155_v61 = vpop.permute.xlu1 %347  ;;  %v1157_v62 = vpop.permute.xlu0 %342 }
  0x9d   :  { %v358_v18 = vpop.permute.xlu1 %357  ;;  %v353_v20 = vpop.permute.xlu0 %352 }
  0xa1   :  { %v368_v46 = vpop.permute.xlu1 %367 }
  0xa3   :  { %v363_v48 = vpop.permute.xlu0 %362 }
  0xf5   :  { %v914_v63 = vpop.f32.mrb[0].mxu0 }
  0xf6   :  { %v382_v0 = vmul.f32 %v914_v63, %v313_v53  ;;  %v946_v1 = vpop.f32.mrb[0].mxu1  ;;  %v170_v2 = vpop.f32.mrb[1].mxu0 }
  0xf7   :  { %v380_v4 = vmul.f32 %v303_v54, %v170_v2  ;;  %v558_v5 = vpop.f32.mrb[1].mxu1  ;;  %v915_v6 = vpop.f32.mrb[2].mxu0 }
  0xf8   :  { %v623_v7 = vadd.f32 %v946_v1, %v382_v0  ;;  %v383_v8 = vmul.f32 %v915_v6, %v318_v55  ;;  %v947_v9 = vpop.f32.mrb[2].mxu1  ;;  %v173_v10 = vpop.f32.mrb[3].mxu0 }
  0xf9   :  { %v621_v11 = vadd.f32 %v558_v5, %v380_v4  ;;  %v381_v12 = vmul.f32 %v308_v56, %v173_v10  ;;  %v561_v13 = vpop.f32.mrb[3].mxu1 }
  0xfa   :  { %v646_v14 = vadd.f32 %v1162_v3, %v623_v7  ;;  %v624_v15 = vadd.f32 %v947_v9, %v383_v8 }
  0xfb   :  { %v644_v16 = vadd.f32 %v1162_v3, %v621_v11  ;;  %v622_v17 = vadd.f32 %v561_v13, %v381_v12  ;;  %v378_v12 = vpop.permute.xlu1 %377 }
  0xfc   :  { %v647_v19 = vadd.f32 %v1162_v3, %v624_v15  ;;  %v662_v23 = vmax.f32 %v646_v14, 0.0  ;;  %v373_v14 = vpop.permute.xlu0 %372 }
  0xfd   :  { %v645_v21 = vadd.f32 %v1162_v3, %v622_v17  ;;  %v918_v22 = vpop.f32.mrb[4].mxu0  ;;  %v660_v28 = vmax.f32 %v644_v16, 0.0 }
  0xfe   :  { %v663_v24 = vmax.f32 %v647_v19, 0.0  ;;  %v386_v25 = vmul.f32 %v918_v22, %v333_v60  ;;  %v950_v26 = vpop.f32.mrb[4].mxu1  ;;  %v186_v27 = vpop.f32.mrb[5].mxu0 }
  0xff   :  { %v661_v29 = vmax.f32 %v645_v21, 0.0  ;;  %v384_v30 = vmul.f32 %v323_v58, %v186_v27  ;;  %v574_v31 = vpop.f32.mrb[5].mxu1  ;;  %v919_v32 = vpop.f32.mrb[6].mxu0 }
 0x100   :  { %v825_v33 = vpack.c.bf16 %v663_v24, %v662_v23  ;;  %v627_v34 = vadd.f32 %v950_v26, %v386_v25  ;;  %v387_v35 = vmul.f32 %v919_v32, %v338_v59  ;;  %v951_v36 = vpop.f32.mrb[6].mxu1  ;;  %v189_v37 = vpop.f32.mrb[7].mxu0 }
 0x101   :  { %v820_v38 = vpack.c.bf16 %v661_v29, %v660_v28  ;;  %v625_v39 = vadd.f32 %v574_v31, %v384_v30  ;;  %v385_v40 = vmul.f32 %v328_v57, %v189_v37  ;;  %v577_v41 = vpop.f32.mrb[7].mxu1 }
 0x102   :  { %857 = vst [vmem:[%s1212_s6 + $0x8] sm:$0xff] %v825_v33   ;;  %v650_v42 = vadd.f32 %v1162_v3, %v627_v34  ;;  %v628_v43 = vadd.f32 %v951_v36, %v387_v35 }
 0x103   :  { %821 = vst [vmem:[%s1212_s6] sm:$0xff] %v820_v38   ;;  %v648_v44 = vadd.f32 %v1162_v3, %v625_v39  ;;  %v626_v45 = vadd.f32 %v577_v41, %v385_v40 }
 0x104   :  { %v651_v47 = vadd.f32 %v1162_v3, %v628_v43  ;;  %v666_v51 = vmax.f32 %v650_v42, 0.0 }
 0x105   :  { %v649_v49 = vadd.f32 %v1162_v3, %v626_v45  ;;  %v922_v50 = vpop.f32.mrb[8].mxu0  ;;  %v664_v56 = vmax.f32 %v648_v44, 0.0 }
 0x106   :  { %v667_v52 = vmax.f32 %v651_v47, 0.0  ;;  %v390_v53 = vmul.f32 %v922_v50, %v353_v20  ;;  %v954_v54 = vpop.f32.mrb[8].mxu1  ;;  %v202_v55 = vpop.f32.mrb[9].mxu0 }
 0x107   :  { %v665_v57 = vmax.f32 %v649_v49, 0.0  ;;  %v388_v58 = vmul.f32 %v1157_v62, %v202_v55  ;;  %v590_v59 = vpop.f32.mrb[9].mxu1  ;;  %v923_v60 = vpop.f32.mrb[10].mxu0 }
 0x108   :  { %v835_v63 = vpack.c.bf16 %v667_v52, %v666_v51  ;;  %v631_v0 = vadd.f32 %v954_v54, %v390_v53  ;;  %v391_v1 = vmul.f32 %v923_v60, %v358_v18  ;;  %v955_v2 = vpop.f32.mrb[10].mxu1  ;;  %v205_v4 = vpop.f32.mrb[11].mxu0 }
 0x109   :  { %v830_v5 = vpack.c.bf16 %v665_v57, %v664_v56  ;;  %v629_v6 = vadd.f32 %v590_v59, %v388_v58  ;;  %v389_v7 = vmul.f32 %v1155_v61, %v205_v4  ;;  %v593_v8 = vpop.f32.mrb[11].mxu1 }
 0x10a   :  { %859 = vst [vmem:[%s1212_s6 + $0x18] sm:$0xff] %v835_v63   ;;  %v654_v9 = vadd.f32 %v1162_v3, %v631_v0  ;;  %v632_v10 = vadd.f32 %v955_v2, %v391_v1 }
 0x10b   :  { %858 = vst [vmem:[%s1212_s6 + $0x10] sm:$0xff] %v830_v5   ;;  %v652_v62 = vadd.f32 %v1162_v3, %v629_v6  ;;  %v630_v11 = vadd.f32 %v593_v8, %v389_v7 }
 0x10c   :  { %v655_v13 = vadd.f32 %v1162_v3, %v632_v10  ;;  %v670_v16 = vmax.f32 %v654_v9, 0.0 }
 0x10d   :  { %v653_v61 = vadd.f32 %v1162_v3, %v630_v11  ;;  %v926_v15 = vpop.f32.mrb[12].mxu0  ;;  %v668_v21 = vmax.f32 %v652_v62, 0.0 }
 0x10e   :  { %v671_v17 = vmax.f32 %v655_v13, 0.0  ;;  %v394_v18 = vmul.f32 %v926_v15, %v373_v14  ;;  %v958_v19 = vpop.f32.mrb[12].mxu1  ;;  %v218_v20 = vpop.f32.mrb[13].mxu0 }
 0x10f   :  { %v669_v22 = vmax.f32 %v653_v61, 0.0  ;;  %v392_v23 = vmul.f32 %v363_v48, %v218_v20  ;;  %v606_v24 = vpop.f32.mrb[13].mxu1  ;;  %v927_v25 = vpop.f32.mrb[14].mxu0 }
 0x110   :  { %v845_v26 = vpack.c.bf16 %v671_v17, %v670_v16  ;;  %v635_v27 = vadd.f32 %v958_v19, %v394_v18  ;;  %v395_v28 = vmul.f32 %v927_v25, %v378_v12  ;;  %v959_v29 = vpop.f32.mrb[14].mxu1  ;;  %v221_v30 = vpop.f32.mrb[15].mxu0 }
 0x111   :  { %v840_v31 = vpack.c.bf16 %v669_v22, %v668_v21  ;;  %v633_v32 = vadd.f32 %v606_v24, %v392_v23  ;;  %v393_v33 = vmul.f32 %v368_v46, %v221_v30  ;;  %v609_v34 = vpop.f32.mrb[15].mxu1 }
 0x112   :  { %861 = vst [vmem:[%s1212_s6 + $0x28] sm:$0xff] %v845_v26   ;;  %v658_v35 = vadd.f32 %v1162_v3, %v635_v27  ;;  %v636_v36 = vadd.f32 %v959_v29, %v395_v28 }
 0x113   :  { %860 = vst [vmem:[%s1212_s6 + $0x20] sm:$0xff] %v840_v31   ;;  %v656_v37 = vadd.f32 %v1162_v3, %v633_v32  ;;  %v634_v38 = vadd.f32 %v609_v34, %v393_v33 }
 0x114   :  { %v659_v39 = vadd.f32 %v1162_v3, %v636_v36  ;;  %v674_v41 = vmax.f32 %v658_v35, 0.0 }
 0x115   :  { %v657_v40 = vadd.f32 %v1162_v3, %v634_v38  ;;  %v672_v43 = vmax.f32 %v656_v37, 0.0 }
 0x116   :  { %v675_v42 = vmax.f32 %v659_v39, 0.0 }
 0x117   :  { %v673_v44 = vmax.f32 %v657_v40, 0.0 }
 0x118   :  { %v855_v45 = vpack.c.bf16 %v675_v42, %v674_v41 }
 0x119   :  { %v850_v46 = vpack.c.bf16 %v673_v44, %v672_v43 }
 0x11a   :  { %863 = vst [vmem:[%s1212_s6 + $0x38] sm:$0xff] %v855_v45  }
 0x11b   :  { %862 = vst [vmem:[%s1212_s6 + $0x30] sm:$0xff] %v850_v46  }

</bundles_post_ra>
